<compile_context>
chip_gen: v6e
topology: v6e:2x2x1
jax: 0.10.0
libtpu: 0.0.40
codegen_flags: <defaults>
</compile_context>

<pallas_src>
import math
from functools import partial
from typing import NamedTuple

import jax
import jax.numpy as jnp
from jax.experimental import pallas as pl
from jax.experimental.pallas import tpu as pltpu


def _round_up(x, m):
    return ((x + m - 1) // m) * m


class _LoRAKernelConfig(NamedTuple):
    d_in: int
    d_out: int
    tm_max: int
    tn: int
    tk: int
    r_pad: int


def _lora_linear_kernel(scales_ref, x_ref, w_ref, b_ref, down_ref, wu_ref,
                        o_ref, acc_ref):
    """One (i, j, k) grid step of the fused LoRA Linear forward.

    scales_ref : SMEM (2,) f32       [scale, multiplier] runtime scalars
    x_ref      : VMEM (tm, tk)       activation tile (compute dtype, e.g. bf16)
    w_ref      : VMEM (tk, tn)       org weight tile, pre-transposed (K, N)
    b_ref      : VMEM (1, tn) f32    org bias tile
    down_ref   : VMEM (tm, r_pad)    precomputed x @ W_down^T tile (per i only)
    wu_ref     : VMEM (r_pad, tn)    lora_up weight tile, pre-transposed (r, N)
    o_ref      : VMEM (tm, tn)       output tile (written at k == last)
    acc_ref    : VMEM (tm, tn) f32   main accumulator scratch
    """
    k = pl.program_id(2)
    nk = pl.num_programs(2)

    @pl.when(k == 0)
    def _():
        acc_ref[...] = jnp.zeros_like(acc_ref)

    # Main path partial product: canonical (tm,tk) x (tk,tn) MXU contraction.
    acc_ref[...] += jnp.dot(x_ref[...], w_ref[...],
                            preferred_element_type=jnp.float32)

    # Epilogue once per (i, j) tile: rank-r up-projection, bias, scaled add.
    @pl.when(k == nk - 1)
    def _():
        s = scales_ref[0] * scales_ref[1]  # scale * multiplier (runtime)
        delta = jnp.dot(down_ref[...], wu_ref[...],
                        preferred_element_type=jnp.float32)
        out = acc_ref[...] + b_ref[...] + delta * s
        o_ref[...] = out.astype(o_ref.dtype)


def prepare_lora_linear_params(w_org, b_org, w_down, w_up, *,
                               tm_max=512, tn_max=512, tk_max=1024,
                               compute_dtype=jnp.bfloat16):
    """One-time (parameter-load-time) pad / transpose / cast of the weights.

    w_org  : [D_out, D_in]  (PyTorch (out, in) convention)
    b_org  : [D_out] or None
    w_down : [r, D_in]
    w_up   : [D_out, r]

    Returns (params_dict, config); config is hashable (static for jit).
    """
    d_out, d_in = w_org.shape
    r = w_down.shape[0]

    tn = min(tn_max, _round_up(d_out, 128))
    tk = min(tk_max, _round_up(d_in, 128))
    r_pad = _round_up(r, 128)
    np_ = _round_up(d_out, tn)
    kp = _round_up(d_in, tk)

    cd = compute_dtype
    # Pre-transpose once to (K, N) / (K, r) / (r, N) so the kernel uses the
    # canonical MXU contraction with no per-k-step transposes.  Zero padding
    # keeps the math exact (padded K rows / r cols contribute 0; padded N
    # columns are sliced off after the kernel).
    w_t = jnp.pad(w_org.T.astype(cd), ((0, kp - d_in), (0, np_ - d_out)))
    if b_org is None:
        b_org = jnp.zeros((d_out,), jnp.float32)
    b_p = jnp.pad(b_org.astype(jnp.float32).reshape(1, d_out),
                  ((0, 0), (0, np_ - d_out)))
    wd_t = jnp.pad(w_down.T.astype(cd), ((0, kp - d_in), (0, r_pad - r)))
    wu_t = jnp.pad(w_up.T.astype(cd), ((0, r_pad - r), (0, np_ - d_out)))

    params = {"w_t": w_t, "b_p": b_p, "wd_t": wd_t, "wu_t": wu_t}
    config = _LoRAKernelConfig(d_in=d_in, d_out=d_out, tm_max=tm_max,
                               tn=tn, tk=tk, r_pad=r_pad)
    return params, config


@partial(jax.jit, static_argnames=("config",))
def lora_linear_forward(x, scale, multiplier, params, *, config):
    """Fused LoRA Linear forward using prepared (padded/cast) parameters.

    x : [..., D_in]; scale/multiplier: runtime scalars.
    """
    *lead, d_in = x.shape
    assert d_in == config.d_in, "x last dim does not match prepared params"
    m = int(math.prod(lead)) if lead else 1

    cd = params["w_t"].dtype
    itemsize_c = jnp.dtype(cd).itemsize
    # Native packed sublane tile: 8 for 4-byte, 16 for 2-byte, 32 for 1-byte.
    sub = {4: 8, 2: 16, 1: 32}[itemsize_c]

    tm = min(config.tm_max, _round_up(m, sub))
    tn, tk, r_pad = config.tn, config.tk, config.r_pad
    mp = _round_up(m, tm)
    kp, np_ = params["w_t"].shape

    # Per-call activation prep: cast to the compute dtype and pad only if
    # needed (weights were padded once at load time).
    x2d = x.reshape(m, d_in).astype(cd)
    if mp != m or kp != d_in:
        x2d = jnp.pad(x2d, ((0, mp - m), (0, kp - d_in)))

    # Tiny rank-r down-projection precomputed once (M*K*r flops) so the kernel
    # never redoes it per j tile and never streams W_down.
    down = jnp.dot(x2d, params["wd_t"],
                   preferred_element_type=jnp.float32).astype(cd)

    # Runtime scalars [scale, multiplier] -> SMEM (no recompile on change).
    scales = jnp.stack([jnp.asarray(scale, jnp.float32).reshape(()),
                        jnp.asarray(multiplier, jnp.float32).reshape(())])

    grid = (mp // tm, np_ // tn, kp // tk)
    n_i, n_j, _ = grid
    out_itemsize = jnp.dtype(x.dtype).itemsize

    flops = 2 * mp * kp * np_ + 2 * mp * r_pad * np_
    bytes_accessed = (mp * kp * itemsize_c * n_j        # x, re-read per j tile
                      + kp * np_ * itemsize_c * n_i     # W_org, re-read per i
                      + np_ * 4 * n_i                   # bias (f32)
                      + mp * r_pad * itemsize_c         # down, once per i tile
                      + r_pad * np_ * itemsize_c * n_i  # W_up, re-read per i
                      + mp * np_ * out_itemsize)        # output

    out2d = pl.pallas_call(
        _lora_linear_kernel,
        out_shape=jax.ShapeDtypeStruct((mp, np_), x.dtype),
        grid=grid,
        in_specs=[
            pl.BlockSpec(memory_space=pltpu.MemorySpace.SMEM),      # scales
            pl.BlockSpec((tm, tk), lambda i, j, k: (i, k)),         # x
            pl.BlockSpec((tk, tn), lambda i, j, k: (k, j)),         # W_org^T
            pl.BlockSpec((1, tn), lambda i, j, k: (0, j)),          # bias
            pl.BlockSpec((tm, r_pad), lambda i, j, k: (i, 0)),      # down
            pl.BlockSpec((r_pad, tn), lambda i, j, k: (0, j)),      # W_up^T
        ],
        out_specs=pl.BlockSpec((tm, tn), lambda i, j, k: (i, j)),
        scratch_shapes=[
            pltpu.VMEM((tm, tn), jnp.float32),   # main f32 accumulator
        ],
        compiler_params=pltpu.CompilerParams(
            # Both i and j stay megacore-shardable because the down projection
            # is a plain input (no cross-j scratch reuse); k is the reduction.
            dimension_semantics=("parallel", "parallel", "arbitrary"),
            # > v5e's 16 MiB scoped default, <= review's v7x guidance (~48 MiB
            # of the 64 MiB physical VMEM).
            vmem_limit_bytes=48 * 1024 * 1024,
        ),
        cost_estimate=pl.CostEstimate(
            flops=flops, transcendentals=0, bytes_accessed=bytes_accessed),
    )(scales, x2d, params["w_t"], params["b_p"], down, params["wu_t"])

    return out2d[:m, :config.d_out].reshape(*lead, config.d_out)


def _kaiming_uniform(key, shape, a=math.sqrt(5)):
    # torch.nn.init.kaiming_uniform_ (fan_in, leaky_relu gain) equivalent.
    fan_in = shape[1]
    gain = math.sqrt(2.0 / (1.0 + a * a))
    bound = gain * math.sqrt(3.0 / fan_in)
    return jax.random.uniform(key, shape, jnp.float32, -bound, bound)


def _reference(x, w_org, b_org, w_down, w_up, scale, multiplier,
               compute_dtype=None):
    """Reference forward.  If compute_dtype is set, mirror the kernel's
    bf16-operand / f32-accumulate numerics; otherwise pure f32."""
    if compute_dtype is None:
        hp = jax.lax.Precision.HIGHEST
        h = jnp.matmul(x, w_org.T, precision=hp) + b_org
        delta = jnp.matmul(jnp.matmul(x, w_down.T, precision=hp), w_up.T,
                           precision=hp)
        return h + delta * scale * multiplier
    cd = compute_dtype
    xc = x.astype(cd)
    h = jnp.matmul(xc, w_org.astype(cd).T,
                   preferred_element_type=jnp.float32) + b_org
    down = jnp.matmul(xc, w_down.astype(cd).T,
                      preferred_element_type=jnp.float32).astype(cd)
    delta = jnp.matmul(down, w_up.astype(cd).T,
                       preferred_element_type=jnp.float32)
    return (h + delta * scale * multiplier).astype(x.dtype)


if __name__ == "__main__":
    # Module config: org_module = Linear(in=32, out=32), lora_dim=4, alpha=1.0,
    # trainable_scale=True (scale param init 1.0), multiplier runtime scalar.
    batch, seq, in_dim, out_dim, lora_dim = 2, 8, 32, 32, 4
    multiplier = 0.5

    key = jax.random.PRNGKey(0)
    kx, kw, kb, kd, ku = jax.random.split(key, 5)

    x = jax.random.normal(kx, (batch, seq, in_dim), jnp.float32)
    w_org = _kaiming_uniform(kw, (out_dim, in_dim))          # (out, in)
    b_org = jax.random.uniform(kb, (out_dim,), jnp.float32, -0.1, 0.1)
    w_down = _kaiming_uniform(kd, (lora_dim, in_dim))        # (r, in)
    # NOTE: the PyTorch module zero-inits lora_up; use small nonzero values so
    # the LoRA branch of the kernel is actually exercised numerically.
    w_up = 0.01 * jax.random.normal(ku, (out_dim, lora_dim), jnp.float32)
    scale = jnp.array(1.0, jnp.float32)  # trainable scale, init 1.0

    params, cfg = prepare_lora_linear_params(w_org, b_org, w_down, w_up)
    out = lora_linear_forward(x, scale, multiplier, params, config=cfg)
    out = jax.block_until_ready(out)
    assert out.shape == (batch, seq, out_dim)

    ref_bf16 = _reference(x, w_org, b_org, w_down, w_up, scale, multiplier,
                          compute_dtype=jnp.bfloat16)
    ref_f32 = _reference(x, w_org, b_org, w_down, w_up, scale, multiplier)
    assert jnp.allclose(out, ref_bf16, atol=2e-3, rtol=2e-3), \
        "mismatch vs bf16-mirrored reference (small cfg)"
    assert jnp.allclose(out, ref_f32, atol=3e-2, rtol=3e-2), \
        "mismatch vs f32 reference (small cfg)"

    # Second (still small) config exercising a real multi-tile (i, j, k) grid
    # with K accumulation, multiple M/N tiles, and padding on the K axis.
    b2_, s2_, in2, out2 = 4, 32, 640, 384
    key2 = jax.random.PRNGKey(1)
    k2x, k2w, k2b, k2d, k2u = jax.random.split(key2, 5)
    x2 = jax.random.normal(k2x, (b2_, s2_, in2), jnp.float32)
    w2 = _kaiming_uniform(k2w, (out2, in2))
    b2 = jax.random.uniform(k2b, (out2,), jnp.float32, -0.1, 0.1)
    wd2 = _kaiming_uniform(k2d, (lora_dim, in2))
    wu2 = 0.01 * jax.random.normal(k2u, (out2, lora_dim), jnp.float32)

    params2, cfg2 = prepare_lora_linear_params(
        w2, b2, wd2, wu2, tm_max=32, tn_max=128, tk_max=256)
    out_big = lora_linear_forward(x2, scale, multiplier, params2, config=cfg2)
    out_big = jax.block_until_ready(out_big)
    ref2_bf16 = _reference(x2, w2, b2, wd2, wu2, scale, multiplier,
                           compute_dtype=jnp.bfloat16)
    ref2_f32 = _reference(x2, w2, b2, wd2, wu2, scale, multiplier)
    assert jnp.allclose(out_big, ref2_bf16, atol=2e-3, rtol=2e-3), \
        "mismatch vs bf16-mirrored reference (tiled cfg)"
    assert jnp.allclose(out_big, ref2_f32, atol=3e-2, rtol=3e-2), \
        "mismatch vs f32 reference (tiled cfg)"

    print("KERNEL_OK")
</pallas_src>

<mosaic_0001>
module attributes {stable_mosaic.version = 11 : i64} {
  func.func @_lora_linear_kernel(%arg0: i32, %arg1: i32, %arg2: i32, %arg3: memref<2xf32, #tpu.memory_space<smem>>, %arg4: memref<16x128xbf16, #tpu.memory_space<vmem>>, %arg5: memref<128x128xbf16, #tpu.memory_space<vmem>>, %arg6: memref<1x128xf32, #tpu.memory_space<vmem>>, %arg7: memref<16x128xbf16, #tpu.memory_space<vmem>>, %arg8: memref<128x128xbf16, #tpu.memory_space<vmem>>, %arg9: memref<16x128xf32, #tpu.memory_space<vmem>>, %arg10: memref<16x128xf32, #tpu.memory_space<vmem>>) attributes {dimension_semantics = [#tpu.dimension_semantics<parallel>, #tpu.dimension_semantics<parallel>, #tpu.dimension_semantics<arbitrary>], iteration_bounds = array<i64: 1, 1, 1>, scalar_prefetch = 0 : i64, scratch_operands = 1 : i64, tpu.core_type = #tpu.core_type<tc>, window_params = [{transform_indices = @transform_0, window_bounds = array<i64: 2>}, {transform_indices = @transform_1, window_bounds = array<i64: 16, 128>}, {transform_indices = @transform_2, window_bounds = array<i64: 128, 128>}, {transform_indices = @transform_3, window_bounds = array<i64: 1, 128>}, {transform_indices = @transform_4, window_bounds = array<i64: 16, 128>}, {transform_indices = @transform_5, window_bounds = array<i64: 128, 128>}, {transform_indices = @transform_6, window_bounds = array<i64: 16, 128>}]} {
    %c0_i32 = arith.constant 0 : i32
    %0 = arith.cmpi eq, %arg2, %c0_i32 : i32
    %1 = arith.extui %0 : i1 to i32
    %c0_i32_0 = arith.constant 0 : i32
    %2 = arith.cmpi ne, %1, %c0_i32_0 : i32
    scf.if %2 {
      %cst_10 = arith.constant 0.000000e+00 : f32
      %12 = vector.broadcast %cst_10 : f32 to vector<16x128xf32>
      %c0_11 = arith.constant 0 : index
      %c0_12 = arith.constant 0 : index
      %13 = vector.load %arg10[%c0_11, %c0_12] : memref<16x128xf32, #tpu.memory_space<vmem>>, vector<16x128xf32>
      tpu.vector_store %arg10[%c0_11, %c0_12], %12 {strides = array<i32>} : memref<16x128xf32, #tpu.memory_space<vmem>>, vector<16x128xf32>,
    } else {
    }
    %c0 = arith.constant 0 : index
    %c0_1 = arith.constant 0 : index
    %3 = vector.load %arg10[%c0, %c0_1] : memref<16x128xf32, #tpu.memory_space<vmem>>, vector<16x128xf32>
    %c0_2 = arith.constant 0 : index
    %c0_3 = arith.constant 0 : index
    %4 = vector.load %arg4[%c0_2, %c0_3] : memref<16x128xbf16, #tpu.memory_space<vmem>>, vector<16x128xbf16>
    %c0_4 = arith.constant 0 : index
    %c0_5 = arith.constant 0 : index
    %5 = vector.load %arg5[%c0_4, %c0_5] : memref<128x128xbf16, #tpu.memory_space<vmem>>, vector<128x128xbf16>
    %cst = arith.constant dense<0.000000e+00> : vector<16x128xf32>
    %6 = tpu.matmul %4, %5, %cst {dimension_numbers = #tpu.dot_dimension_numbers<[1], [0], [0], [1], [0, 0, 1, 1], [], []>} : vector<16x128xbf16>, vector<128x128xbf16>, vector<16x128xf32> -> vector<16x128xf32>
    %7 = arith.addf %3, %6 : vector<16x128xf32>
    %c0_6 = arith.constant 0 : index
    %c0_7 = arith.constant 0 : index
    %8 = vector.load %arg10[%c0_6, %c0_7] : memref<16x128xf32, #tpu.memory_space<vmem>>, vector<16x128xf32>
    tpu.vector_store %arg10[%c0_6, %c0_7], %7 {strides = array<i32>} : memref<16x128xf32, #tpu.memory_space<vmem>>, vector<16x128xf32>,
    %c0_i32_8 = arith.constant 0 : i32
    %9 = arith.cmpi eq, %arg2, %c0_i32_8 : i32
    %10 = arith.extui %9 : i1 to i32
    %c0_i32_9 = arith.constant 0 : i32
    %11 = arith.cmpi ne, %10, %c0_i32_9 : i32
    scf.if %11 {
      %c0_10 = arith.constant 0 : index
      %12 = memref.load %arg3[%c0_10] : memref<2xf32, #tpu.memory_space<smem>>
      %c1 = arith.constant 1 : index
      %13 = memref.load %arg3[%c1] : memref<2xf32, #tpu.memory_space<smem>>
      %14 = arith.mulf %12, %13 : f32
      %c0_11 = arith.constant 0 : index
      %c0_12 = arith.constant 0 : index
      %15 = vector.load %arg7[%c0_11, %c0_12] : memref<16x128xbf16, #tpu.memory_space<vmem>>, vector<16x128xbf16>
      %c0_13 = arith.constant 0 : index
      %c0_14 = arith.constant 0 : index
      %16 = vector.load %arg8[%c0_13, %c0_14] : memref<128x128xbf16, #tpu.memory_space<vmem>>, vector<128x128xbf16>
      %cst_15 = arith.constant dense<0.000000e+00> : vector<16x128xf32>
      %17 = tpu.matmul %15, %16, %cst_15 {dimension_numbers = #tpu.dot_dimension_numbers<[1], [0], [0], [1], [0, 0, 1, 1], [], []>} : vector<16x128xbf16>, vector<128x128xbf16>, vector<16x128xf32> -> vector<16x128xf32>
      %c0_16 = arith.constant 0 : index
      %c0_17 = arith.constant 0 : index
      %18 = vector.load %arg10[%c0_16, %c0_17] : memref<16x128xf32, #tpu.memory_space<vmem>>, vector<16x128xf32>
      %c0_18 = arith.constant 0 : index
      %c0_19 = arith.constant 0 : index
      %19 = vector.load %arg6[%c0_18, %c0_19] : memref<1x128xf32, #tpu.memory_space<vmem>>, vector<1x128xf32>
      %20 = vector.broadcast %19 : vector<1x128xf32> to vector<16x128xf32>
      %21 = arith.addf %18, %20 : vector<16x128xf32>
      %22 = vector.broadcast %14 : f32 to vector<16x128xf32>
      %23 = arith.mulf %17, %22 : vector<16x128xf32>
      %24 = arith.addf %21, %23 : vector<16x128xf32>
      %c0_20 = arith.constant 0 : index
      %c0_21 = arith.constant 0 : index
      %25 = vector.load %arg9[%c0_20, %c0_21] : memref<16x128xf32, #tpu.memory_space<vmem>>, vector<16x128xf32>
      tpu.vector_store %arg9[%c0_20, %c0_21], %24 {strides = array<i32>} : memref<16x128xf32, #tpu.memory_space<vmem>>, vector<16x128xf32>,
    } else {
    }
    return
  }
  func.func @transform_0(%arg0: i32, %arg1: i32, %arg2: i32) -> i32 {
    %c0_i32 = arith.constant 0 : i32
    %c0_i32_0 = arith.constant 0 : i32
    return %c0_i32 : i32
  }
  func.func @transform_1(%arg0: i32, %arg1: i32, %arg2: i32) -> (i32, i32) {
    %c0_i32 = arith.constant 0 : i32
    return %arg0, %arg2 : i32, i32
  }
  func.func @transform_2(%arg0: i32, %arg1: i32, %arg2: i32) -> (i32, i32) {
    %c0_i32 = arith.constant 0 : i32
    return %arg2, %arg1 : i32, i32
  }
  func.func @transform_3(%arg0: i32, %arg1: i32, %arg2: i32) -> (i32, i32) {
    %c0_i32 = arith.constant 0 : i32
    %c0_i32_0 = arith.constant 0 : i32
    return %c0_i32, %arg1 : i32, i32
  }
  func.func @transform_4(%arg0: i32, %arg1: i32, %arg2: i32) -> (i32, i32) {
    %c0_i32 = arith.constant 0 : i32
    %c0_i32_0 = arith.constant 0 : i32
    return %arg0, %c0_i32 : i32, i32
  }
  func.func @transform_5(%arg0: i32, %arg1: i32, %arg2: i32) -> (i32, i32) {
    %c0_i32 = arith.constant 0 : i32
    %c0_i32_0 = arith.constant 0 : i32
    return %c0_i32, %arg1 : i32, i32
  }
  func.func @transform_6(%arg0: i32, %arg1: i32, %arg2: i32) -> (i32, i32) {
    %c0_i32 = arith.constant 0 : i32
    return %arg0, %arg1 : i32, i32
  }
}

</mosaic_0001>

<bundles_post_ra>
// kernel: lora_linear_forward.1
= control target key start
LH: loop header
LB: loop body
LE: loop exit
PB: predicated region body
PF: predicated region fallthrough
CT: control target
= control target key end

     0   :  { %11 = vsyncpa [#allocation4], 0  ;;  %s521_s0 = inlined_call_operand.vmem [shape: f32[2], index: 0, kind: input, shape index: {}]   ;;  %s522_s1 = inlined_call_operand.vmem [shape: bf16[16,128], index: 1, kind: input, shape index: {}]   ;;  %s523_s2 = inlined_call_operand.vmem [shape: bf16[128,128], index: 2, kind: input, shape index: {}]   ;;  %s524_s3 = inlined_call_operand.vmem [shape: f32[1,128], index: 3, kind: input, shape index: {}]   ;;  %s525_s4 = inlined_call_operand.vmem [shape: bf16[16,128], index: 4, kind: input, shape index: {}]   ;;  %s526_s5 = inlined_call_operand.vmem [shape: bf16[128,128], index: 5, kind: input, shape index: {}]   ;;  %s527_s6 = inlined_call_operand.vmem [shape: f32[16,128], index: 6, kind: output, shape index: {}]  }
   0x1   :  { %s18_s23 = sshll.u32 %s521_s0, 4  ;;  %s19_s23 = int_to_ptr.vmem [resolvable:$true] %s18_s23 }
   0x2   :  { %s403_s24 = scalar_lea.vmem %s19_s23, 16  ;;  %p408_p1 = scmp.lt.s32.totalorder %s19_s23, %s19_s23 }
   0x3   :  { %p404_p0 = scmp.ne.s32.totalorder %s19_s23, %s403_s24  ;;  %p409_p2 = scmp.lt.s32.totalorder %s403_s24, %s403_s24 }
   0x5   :  { %p410_p3 = por %p409_p2, %p408_p1 }
   0x7   :  { %p411_p4 = pnand %p410_p3, %p404_p0 }
   0x9   :  { %414 = shalt.err (!%p411_p4)
}
   0xa   :  { %s417_s25 = smov [#allocation3]  }
   0xb   :  { %21 = dma.vmem_to_smem %s19_s23, 16, %s417_s25, [#allocation4]  }
   0xc   :  { %415 = dma.done.wait [#allocation4], 16  }
   0xd   :  { %416 = vsyncadd [#allocation4], 4294967280 }
   0xe   :  { %35 = sfence }
   0xf   :  { %v385_v0 = vld [vmem:[%s523_s2 + $0x38] sm:$0xff]   ;;  %v418_v1 = vmov 0.0   ;;  %v387_v3 = vld [vmem:[%s523_s2 + $0x30] sm:$0xff]   ;;  %vm419_vm0 = vmmov 0   ;;  %v389_v5 = vld [vmem:[%s523_s2 + $0x28] sm:$0xff]   ;;  %s313_s12 = sld [smem:[#allocation3 + $0x1]] }
  0x10   :  { %342 = vmatprep.subr.bf16.mxu0 %v418_v1  ;;  %362 = vmatprep.subr.bf16.mxu1 %v418_v1  ;;  %v386_v2 = vld [vmem:[%s526_s5 + $0x38] sm:$0xff]   ;;  %v388_v4 = vld [vmem:[%s526_s5 + $0x30] sm:$0xff]   ;;  %v390_v6 = vld [vmem:[%s526_s5 + $0x28] sm:$0xff]  }
  0x11   :  { %343 = vmatpush3.bf16.msra.mxu0 %v385_v0  ;;  %358 = vmatprep.mubr.msk.bf16.mxu0 %vm419_vm0, %v418_v1  ;;  %v391_v7 = vld [vmem:[%s523_s2 + $0x20] sm:$0xff]   ;;  %v393_v9 = vld [vmem:[%s523_s2 + $0x18] sm:$0xff]   ;;  %v395_v11 = vld [vmem:[%s523_s2 + $0x10] sm:$0xff]  }
  0x12   :  { %363 = vmatpush3.bf16.msra.mxu1 %v386_v2  ;;  %344 = vmatprep.subr.bf16.mxu0 %v418_v1  ;;  %v392_v8 = vld [vmem:[%s526_s5 + $0x20] sm:$0xff]   ;;  %v394_v10 = vld [vmem:[%s526_s5 + $0x18] sm:$0xff]   ;;  %v396_v12 = vld [vmem:[%s526_s5 + $0x10] sm:$0xff]  }
  0x13   :  { %364 = vmatprep.subr.bf16.mxu1 %v418_v1  ;;  %378 = vmatprep.mubr.msk.bf16.mxu1 %vm419_vm0, %v418_v1  ;;  %v397_v13 = vld [vmem:[%s523_s2 + $0x8] sm:$0xff]   ;;  %v399_v15 = vld [vmem:[%s523_s2] sm:$0xff]   ;;  %s165_s2 = sld [smem:[#allocation3]] }
  0x14   :  { %v398_v14 = vld [vmem:[%s526_s5 + $0x8] sm:$0xff]   ;;  %v400_v16 = vld [vmem:[%s526_s5] sm:$0xff]  }
  0x15   :  { %345 = vmatpush3.bf16.msra.mxu0 %v387_v3  ;;  %v401_v17 = vld [vmem:[%s522_s1] sm:$0xff]  }
  0x16   :  { %365 = vmatpush3.bf16.msra.mxu1 %v388_v4  ;;  %346 = vmatprep.subr.bf16.mxu0 %v418_v1  ;;  %v402_v18 = vld [vmem:[%s525_s4] sm:$0xff]  }
  0x17   :  { %366 = vmatprep.subr.bf16.mxu1 %v418_v1  ;;  %v323_v19 = vld [vmem:[%s524_s3] ss:$0 sm:$0xff] }
  0x19   :  { %347 = vmatpush3.bf16.msra.mxu0 %v389_v5  ;;  %s167_s13 = smul.f32 %s313_s12, %s165_s2 }
  0x1a   :  { %367 = vmatpush3.bf16.msra.mxu1 %v390_v6  ;;  %348 = vmatprep.subr.bf16.mxu0 %v418_v1 }
  0x1b   :  { %368 = vmatprep.subr.bf16.mxu1 %v418_v1  ;;  %v292_v20 = vstv %s167_s13 }
  0x1d   :  { %349 = vmatpush3.bf16.msra.mxu0 %v391_v7 }
  0x1e   :  { %369 = vmatpush3.bf16.msra.mxu1 %v392_v8  ;;  %350 = vmatprep.subr.bf16.mxu0 %v418_v1 }
  0x1f   :  { %370 = vmatprep.subr.bf16.mxu1 %v418_v1 }
  0x21   :  { %351 = vmatpush3.bf16.msra.mxu0 %v393_v9 }
  0x22   :  { %371 = vmatpush3.bf16.msra.mxu1 %v394_v10  ;;  %352 = vmatprep.subr.bf16.mxu0 %v418_v1 }
  0x23   :  { %372 = vmatprep.subr.bf16.mxu1 %v418_v1 }
  0x25   :  { %353 = vmatpush3.bf16.msra.mxu0 %v395_v11 }
  0x26   :  { %373 = vmatpush3.bf16.msra.mxu1 %v396_v12  ;;  %354 = vmatprep.subr.bf16.mxu0 %v418_v1 }
  0x27   :  { %374 = vmatprep.subr.bf16.mxu1 %v418_v1 }
  0x29   :  { %355 = vmatpush3.bf16.msra.mxu0 %v397_v13 }
  0x2a   :  { %375 = vmatpush3.bf16.msra.mxu1 %v398_v14  ;;  %356 = vmatprep.subr.bf16.mxu0 %v418_v1 }
  0x2b   :  { %376 = vmatprep.subr.bf16.mxu1 %v418_v1 }
  0x2d   :  { %357 = vmatpush3.bf16.msra.mxu0 %v399_v15 }
  0x2e   :  { %377 = vmatpush3.bf16.msra.mxu1 %v400_v16 }
  0x30   :  { %359 = vmatmul.mubr.bf16.vlgmr.msra.gmra.mxu0 %v401_v17 }
  0x31   :  { %379 = vmatmul.mubr.bf16.vlgmr.msra.gmra.mxu1 %v402_v18 }
  0xf0   :  { %v151_v21 = vpop.f32.mrf.mxu0 }
  0xf1   :  { %v290_v22 = vadd.f32 %v323_v19, %v151_v21  ;;  %v274_v23 = vpop.f32.mrf.mxu1 }
  0xf2   :  { %v293_v24 = vmul.f32 %v292_v20, %v274_v23  ;;  %v360_v25 = vpop.f32.mrf.mxu0 }
  0xf3   :  { %v380_v26 = vpop.f32.mrf.mxu1 }
  0xf4   :  { %v295_v27 = vadd.f32 %v293_v24, %v290_v22  ;;  %v154_v28 = vpop.f32.mrf.mxu0 }
  0xf5   :  { %v291_v29 = vadd.f32 %v323_v19, %v154_v28  ;;  %v277_v30 = vpop.f32.mrf.mxu1 }
  0xf6   :  { %297 = vst [vmem:[%s527_s6] sm:$0xff] %v295_v27  ;;  %v294_v31 = vmul.f32 %v292_v20, %v277_v30  ;;  %v361_v32 = vpop.f32.mrf.mxu0 }
  0xf7   :  { %v381_v33 = vpop.f32.mrf.mxu1 }
  0xf8   :  { %v296_v34 = vadd.f32 %v294_v31, %v291_v29 }
  0xfa   :  { %298 = vst [vmem:[%s527_s6 + $0x8] sm:$0xff] %v296_v34 }
  0xfb   :  { %303 = vsyncpa [#allocation4], 1 }

</bundles_post_ra>
